<compile_context>
chip_gen: v7x
topology: tpu7x:2x2x1
jax: 0.10.0
libtpu: 0.0.40
codegen_flags: <defaults>
</compile_context>

<pallas_src>
import functools

import jax
import jax.numpy as jnp
from jax.experimental import pallas as pl
from jax.experimental.pallas import tpu as pltpu


# ---------------------------------------------------------------------------
# small helpers
# ---------------------------------------------------------------------------
def _round_up(x, m):
    return (x + m - 1) // m * m


def _pad_axis(a, axis, new_size):
    pad = new_size - a.shape[axis]
    if pad <= 0:
        return a
    widths = [(0, 0)] * a.ndim
    widths[axis] = (0, pad)
    return jnp.pad(a, widths)


def _pick_tile_n(S, D, N, target):
    """Choose the decoder column tile TN and the padded width NP.

    Preferred: TN = TS*D with TS | S (requires D % 128 == 0) -> NP == N, so
    no column padding and no output slicing.  Fallback: pad N up to a
    multiple of a 128-aligned tile (never TN = N for huge N).
    """
    if D % 128 == 0:
        ts = max(1, min(S, max(1, target // D)))
        while ts > 1 and S % ts != 0:
            ts -= 1
        return ts * D, N
    tn = min(_round_up(target, 128), _round_up(N, 128))
    return tn, _round_up(N, tn)


# ---------------------------------------------------------------------------
# encoder kernel: masked mean pool over S, then Linear(D -> L) on the MXU
# ---------------------------------------------------------------------------
def encoder_kernel(x_ref, mask_ref, we_ref, be_ref, z_ref):
    x = x_ref[...].astype(jnp.float32)              # (B, S, D)
    m = mask_ref[...].astype(jnp.float32)           # (B, S, 1) lane-broadcast
    pooled = jnp.sum(x * m, axis=1)                 # (B, D)
    denom = jnp.maximum(jnp.sum(m, axis=1), 1.0)    # (B, 1)
    pooled = pooled / denom
    z = jnp.dot(pooled.astype(we_ref.dtype), we_ref[...],
                preferred_element_type=jnp.float32)
    z = z + be_ref[...].astype(jnp.float32)         # (B, LP)
    z_ref[...] = z.astype(z_ref.dtype)


# ---------------------------------------------------------------------------
# decoder kernel: one lane-dense column tile of Linear(L -> N) + SSE partial
# ---------------------------------------------------------------------------
def decoder_loss_kernel(z_ref, wd_ref, bd_ref, x_ref, recon_ref, lpart_ref):
    # (B, LP) @ (LP, TN) on the MXU, bf16 x bf16 -> f32 accumulate.
    recon = jnp.dot(z_ref[...], wd_ref[...], preferred_element_type=jnp.float32)
    recon = recon + bd_ref[...].astype(jnp.float32)
    recon_ref[...] = recon.astype(recon_ref.dtype)  # lane-dense (B, TN) store

    # per-tile squared-error partial (f32 on the VPU/XLU); no batch mask
    # needed because nothing is batch-padded.
    diff = x_ref[...].astype(jnp.float32) - recon
    sse = jnp.sum(diff * diff)
    lpart_ref[...] = jnp.full(lpart_ref.shape, sse, jnp.float32)


# ---------------------------------------------------------------------------
# wrapper
# ---------------------------------------------------------------------------
def _encode(input_encoding, attention_mask, params, out_dtype):
    B, S, D = input_encoding.shape
    L = params["w_enc"].shape[1]
    LP = _round_up(L, 128)

    mask = attention_mask.astype(jnp.float32)[:, :, None]   # (B, S, 1)
    w_enc = _pad_axis(params["w_enc"], 1, LP)                # (D, LP)
    b_enc = _pad_axis(params["b_enc"], 1, LP)                # (1, LP)

    vmem_need = (input_encoding.nbytes + mask.nbytes + w_enc.nbytes
                 + b_enc.nbytes + B * LP * 4)
    vmem_limit = int(min(48 * 1024 * 1024,
                         max(16 * 1024 * 1024, 2 * vmem_need)))
    flops = int(2 * B * S * D + 2 * B * D * LP)

    z = pl.pallas_call(
        encoder_kernel,
        out_shape=jax.ShapeDtypeStruct((B, LP), out_dtype),
        in_specs=[
            pl.BlockSpec((B, S, D), lambda: (0, 0, 0)),
            pl.BlockSpec((B, S, 1), lambda: (0, 0, 0)),
            pl.BlockSpec((D, LP), lambda: (0, 0)),
            pl.BlockSpec((1, LP), lambda: (0, 0)),
        ],
        out_specs=pl.BlockSpec((B, LP), lambda: (0, 0)),
        compiler_params=pltpu.CompilerParams(vmem_limit_bytes=vmem_limit),
        cost_estimate=pl.CostEstimate(flops=flops, transcendentals=0,
                                      bytes_accessed=int(vmem_need)),
    )(input_encoding, mask, w_enc, b_enc)
    return z, LP


def full_seq_ae_forward(input_encoding, attention_mask, params,
                        just_get_latent=False, just_get_encoding=False,
                        tile_n=4096):
    B, S, D = input_encoding.shape
    L = params["w_enc"].shape[1]
    N = S * D

    if just_get_latent:
        z, _ = _encode(input_encoding, attention_mask, params, jnp.float32)
        return z[:, :L]

    # --- encoder: tiny separate pallas_call; z kept in bf16 for the MXU ---
    z, LP = _encode(input_encoding, attention_mask, params,
                    params["w_dec"].dtype)

    # --- decoder: grid over column tiles of the flattened output axis N ---
    TN, NP = _pick_tile_n(S, D, N, tile_n)
    NT = NP // TN

    w_dec = _pad_axis(_pad_axis(params["w_dec"], 0, LP), 1, NP)   # (LP, NP)
    b_dec = _pad_axis(params["b_dec"], 1, NP)                      # (1, NP)
    x_flat = _pad_axis(input_encoding.reshape(B, N), 1, NP)        # (B, NP)

    # VMEM budget: double-buffered streamed tiles + tiny resident z + margin.
    tile_bytes = (LP * TN * w_dec.dtype.itemsize
                  + TN * b_dec.dtype.itemsize
                  + B * TN * x_flat.dtype.itemsize
                  + B * TN * input_encoding.dtype.itemsize
                  + 8 * 128 * 4)
    resident_bytes = B * LP * z.dtype.itemsize
    vmem_limit = int(min(48 * 1024 * 1024,
                         max(16 * 1024 * 1024,
                             4 * (resident_bytes + 2 * tile_bytes))))

    flops = int(2 * B * LP * NP + 3 * B * NP)
    bytes_accessed = int(z.nbytes + w_dec.nbytes + b_dec.nbytes
                         + x_flat.nbytes + B * NP * 4 + NT * 8 * 128 * 4)

    recon_flat, lpart = pl.pallas_call(
        decoder_loss_kernel,
        out_shape=(
            jax.ShapeDtypeStruct((B, NP), input_encoding.dtype),
            jax.ShapeDtypeStruct((8, NT * 128), jnp.float32),
        ),
        grid=(NT,),
        in_specs=[
            pl.BlockSpec((B, LP), lambda j: (0, 0)),     # z   (resident, tiny)
            pl.BlockSpec((LP, TN), lambda j: (0, j)),    # w_dec (streamed, bf16)
            pl.BlockSpec((1, TN), lambda j: (0, j)),     # b_dec (streamed)
            pl.BlockSpec((B, TN), lambda j: (0, j)),     # x     (streamed once)
        ],
        out_specs=(
            pl.BlockSpec((B, TN), lambda j: (0, j)),     # recon (lane-dense)
            pl.BlockSpec((8, 128), lambda j: (0, j)),    # per-tile SSE partial
        ),
        compiler_params=pltpu.CompilerParams(
            dimension_semantics=("parallel",),           # megacore-friendly
            vmem_limit_bytes=vmem_limit),
        cost_estimate=pl.CostEstimate(flops=flops, transcendentals=0,
                                      bytes_accessed=bytes_accessed),
    )(z, w_dec, b_dec, x_flat)

    if NP != N:
        recon_encoding = recon_flat[:, :N].reshape(B, S, D)
    else:
        recon_encoding = recon_flat.reshape(B, S, D)     # free reshape
    if just_get_encoding:
        return recon_encoding

    sse = jnp.sum(lpart[0].reshape(NT, 128)[:, 0])       # one partial per tile
    recon_loss = sse / jnp.float32(B * S * D)
    reg_loss = jnp.float32(0.0)
    return recon_loss, reg_loss, recon_encoding


# ---------------------------------------------------------------------------
# Deterministic parameter init (synthetic — no checkpoint load)
# Weights stored in bf16 (dominant HBM stream), biases in f32.
# ---------------------------------------------------------------------------
def init_params(key, D, L, S):
    k1, k2, k3, k4 = jax.random.split(key, 4)
    return {
        "w_enc": (jax.random.normal(k1, (D, L), jnp.float32)
                  / jnp.sqrt(jnp.float32(D))).astype(jnp.bfloat16),
        "b_enc": jax.random.normal(k2, (1, L), jnp.float32) * 0.01,
        "w_dec": (jax.random.normal(k3, (L, S * D), jnp.float32)
                  / jnp.sqrt(jnp.float32(L))).astype(jnp.bfloat16),
        "b_dec": jax.random.normal(k4, (1, S * D), jnp.float32) * 0.01,
    }


if __name__ == "__main__":
    B, S, D, L = 2, 8, 128, 128

    key = jax.random.PRNGKey(0)
    kx, kp = jax.random.split(key)
    input_encoding = jax.random.normal(kx, (B, S, D), jnp.float32)
    # deterministic mask: first batch fully valid, second batch half padded
    attention_mask = jnp.concatenate(
        [jnp.ones((1, S), jnp.float32),
         jnp.concatenate([jnp.ones((1, S // 2), jnp.float32),
                          jnp.zeros((1, S // 2), jnp.float32)], axis=1)],
        axis=0)

    params = init_params(kp, D, L, S)

    recon_loss, reg_loss, recon = full_seq_ae_forward(
        input_encoding, attention_mask, params, tile_n=4096)
    latent = full_seq_ae_forward(input_encoding, attention_mask, params,
                                 just_get_latent=True)
    jax.block_until_ready((recon_loss, reg_loss, recon, latent))

    # lightweight pure-JAX reference (mirrors the bf16-weight MXU path)
    m3 = attention_mask[:, :, None]
    pooled = (input_encoding * m3).sum(1) / jnp.maximum(m3.sum(1), 1.0)
    z_ref = jnp.dot(pooled.astype(jnp.bfloat16), params["w_enc"],
                    preferred_element_type=jnp.float32) + params["b_enc"]
    recon_ref = (jnp.dot(z_ref.astype(jnp.bfloat16), params["w_dec"],
                         preferred_element_type=jnp.float32)
                 + params["b_dec"]).reshape(B, S, D)
    loss_ref = jnp.mean((input_encoding - recon_ref) ** 2)

    assert jnp.allclose(latent, z_ref, rtol=1e-2, atol=1e-2), \
        float(jnp.max(jnp.abs(latent - z_ref)))
    assert jnp.allclose(recon, recon_ref, rtol=1e-2, atol=1e-2), \
        float(jnp.max(jnp.abs(recon - recon_ref)))
    assert jnp.allclose(recon_loss, loss_ref, rtol=1e-2, atol=1e-2), \
        (float(recon_loss), float(loss_ref))

    print("KERNEL_OK")
</pallas_src>

<mosaic_0001>
module attributes {stable_mosaic.version = 11 : i64} {
  func.func @encoder_kernel(%arg0: memref<2x8x128xf32, #tpu.memory_space<vmem>>, %arg1: memref<2x8x1xf32, #tpu.memory_space<vmem>>, %arg2: memref<128x128xbf16, #tpu.memory_space<vmem>>, %arg3: memref<1x128xf32, #tpu.memory_space<vmem>>, %arg4: memref<2x128xbf16, #tpu.memory_space<vmem>>) attributes {dimension_semantics = [], scalar_prefetch = 0 : i64, scratch_operands = 0 : i64, tpu.core_type = #tpu.core_type<tc>} {
    %c0 = arith.constant 0 : index
    %c0_0 = arith.constant 0 : index
    %c0_1 = arith.constant 0 : index
    %0 = vector.load %arg0[%c0, %c0_0, %c0_1] : memref<2x8x128xf32, #tpu.memory_space<vmem>>, vector<2x8x128xf32>
    %c0_2 = arith.constant 0 : index
    %c0_3 = arith.constant 0 : index
    %c0_4 = arith.constant 0 : index
    %1 = vector.load %arg1[%c0_2, %c0_3, %c0_4] : memref<2x8x1xf32, #tpu.memory_space<vmem>>, vector<2x8x1xf32>
    %2 = vector.broadcast %1 : vector<2x8x1xf32> to vector<2x8x128xf32>
    %3 = arith.mulf %0, %2 : vector<2x8x128xf32>
    %cst = arith.constant dense<0.000000e+00> : vector<2x128xf32>
    %4 = vector.multi_reduction <add>, %3, %cst [1] : vector<2x8x128xf32> to vector<2x128xf32>
    %cst_5 = arith.constant dense<0.000000e+00> : vector<2x1xf32>
    %5 = vector.multi_reduction <add>, %1, %cst_5 [1] : vector<2x8x1xf32> to vector<2x1xf32>
    %cst_6 = arith.constant 1.000000e+00 : f32
    %6 = vector.broadcast %cst_6 : f32 to vector<2x1xf32>
    %7 = arith.maximumf %5, %6 : vector<2x1xf32>
    %8 = vector.broadcast %7 : vector<2x1xf32> to vector<2x128xf32>
    %9 = arith.divf %4, %8 : vector<2x128xf32>
    %10 = arith.truncf %9 : vector<2x128xf32> to vector<2x128xbf16>
    %c0_7 = arith.constant 0 : index
    %c0_8 = arith.constant 0 : index
    %11 = vector.load %arg2[%c0_7, %c0_8] : memref<128x128xbf16, #tpu.memory_space<vmem>>, vector<128x128xbf16>
    %cst_9 = arith.constant dense<0.000000e+00> : vector<2x128xf32>
    %12 = tpu.matmul %10, %11, %cst_9 {dimension_numbers = #tpu.dot_dimension_numbers<[1], [0], [0], [1], [0, 0, 1, 1], [], []>} : vector<2x128xbf16>, vector<128x128xbf16>, vector<2x128xf32> -> vector<2x128xf32>
    %c0_10 = arith.constant 0 : index
    %c0_11 = arith.constant 0 : index
    %13 = vector.load %arg3[%c0_10, %c0_11] : memref<1x128xf32, #tpu.memory_space<vmem>>, vector<1x128xf32>
    %14 = vector.broadcast %13 : vector<1x128xf32> to vector<2x128xf32>
    %15 = arith.addf %12, %14 : vector<2x128xf32>
    %16 = arith.truncf %15 : vector<2x128xf32> to vector<2x128xbf16>
    %c0_12 = arith.constant 0 : index
    %c0_13 = arith.constant 0 : index
    %17 = vector.load %arg4[%c0_12, %c0_13] : memref<2x128xbf16, #tpu.memory_space<vmem>>, vector<2x128xbf16>
    tpu.vector_store %arg4[%c0_12, %c0_13], %16 {strides = array<i32>} : memref<2x128xbf16, #tpu.memory_space<vmem>>, vector<2x128xbf16>,
    return
  }
}

</mosaic_0001>

<bundles_post_ra>
// kernel: tpu_custom_call.1
= control target key start
LH: loop header
LB: loop body
LE: loop exit
PB: predicated region body
PF: predicated region fallthrough
CT: control target
= control target key end

     0   :  { %9 = vsyncpa [#allocation3], 0  ;;  %s408_s0 = inlined_call_operand.vmem [shape: f32[2,8,128], index: 0, kind: input, shape index: {}]   ;;  %s409_s1 = inlined_call_operand.vmem [shape: f32[2,8,1], index: 1, kind: input, shape index: {}]   ;;  %s410_s2 = inlined_call_operand.hbm [shape: bf16[128,128], index: 2, kind: input, shape index: {}]   ;;  %s411_s3 = inlined_call_operand.vmem [shape: f32[1,128], index: 3, kind: input, shape index: {}]   ;;  %s412_s4 = inlined_call_operand.hbm [shape: bf16[2,128], index: 4, kind: output, shape index: {}]  }
   0x1   :  { %10 = vsyncpa [#allocation4], 0  ;;  %s337_s15 = smov [#allocation2]   ;;  %s289_s19 = scalar_lea.hbm %s410_s2, 1024 }
   0x2   :  { %s20_s16 = sshll.u32 %s337_s15, 4  ;;  %p290_p0 = scmp.ne.s32.totalorder %s410_s2, %s289_s19  ;;  %s21_s16 = int_to_ptr.vmem [resolvable:$true] %s20_s16 }
   0x3   :  { %p293_p1 = scmp.lt.u32.totalorder %s289_s19, %s410_s2 }
   0x5   :  { %p295_p2 = pnand %p293_p1, %p290_p0 }
   0x7   :  { %298 = shalt.err (!%p295_p2)
}
   0x8   :  { %s299_s24 = scalar_lea.vmem %s21_s16, 1024  ;;  %p304_p4 = scmp.lt.s32.totalorder %s21_s16, %s21_s16 }
   0x9   :  { %p300_p3 = scmp.ne.s32.totalorder %s21_s16, %s299_s24  ;;  %p305_p5 = scmp.lt.s32.totalorder %s299_s24, %s299_s24 }
   0xb   :  { %p306_p6 = por %p305_p5, %p304_p4 }
   0xd   :  { %p307_p7 = pnand %p306_p6, %p300_p3 }
   0xf   :  { %310 = shalt.err (!%p307_p7)
}
  0x10   :  { %s338_s25 = smov 64   ;;  %s339_s26 = smov 4  }
  0x11   :  { %26 = dma.hbm_to_vmem [thread:$0]  %s410_s2, 1024, %s21_s16, [#allocation3], %s338_s25, %s338_s25, %s339_s26  }
  0x12   :  { %333 = dma.done.wait [#allocation3], 1024  }
  0x13   :  { %334 = vsyncadd [#allocation3], 4294966272  ;;  %v340_v0 = vmov 0   ;;  %vm61_vm0 = vcmask 7168   ;;  %v35_v1 = vld [vmem:[%s409_s1] sm:$0xff]  ;;  %v36_v2 = vld [vmem:[%s409_s1 + $0x8] sm:$0xff] }
  0x14   :  { %275 = vset.pattern.permute.xlu0 %v340_v0  ;;  %276 = vset.pattern.permute.xlu1 %v340_v0  ;;  %v62_v3 = vsel %vm61_vm0, %v35_v1, 0.0  ;;  %v69_v4 = vsel %vm61_vm0, %v36_v2, 0.0  ;;  %v277_v11 = vld [vmem:[#allocation2] sm:$0xff]   ;;  %v341_v14 = vmov 0.0   ;;  %v278_v17 = vld [vmem:[#allocation2 + $0x8] sm:$0xff]   ;;  %v279_v21 = vld [vmem:[#allocation2 + $0x10] sm:$0xff]  }
  0x15   :  { %39 = vperm.xlu0 %275, %v35_v1   ;;  %v63_v5 = vrot.slane %v62_v3, 4  ;;  %v70_v6 = vrot.slane %v69_v4, 4  ;;  %248 = vmatprep.subr.bf16.mxu0 %v341_v14  ;;  %v280_v23 = vld [vmem:[#allocation2 + $0x18] sm:$0xff]   ;;  %v281_v24 = vld [vmem:[#allocation2 + $0x20] sm:$0xff]   ;;  %vm342_vm1 = vmmov 0   ;;  %v282_v25 = vld [vmem:[#allocation2 + $0x28] sm:$0xff]  }
  0x16   :  { %249 = vmatpush3.bf16.msra.mxu0 %v277_v11  ;;  %264 = vmatprep.mubr.msk.bf16.mxu0 %vm342_vm1, %v341_v14  ;;  %v283_v26 = vld [vmem:[#allocation2 + $0x30] sm:$0xff]   ;;  %v284_v27 = vld [vmem:[#allocation2 + $0x38] sm:$0xff]   ;;  %v33_v28 = vld [vmem:[%s408_s0] sm:$0xff]  ;;  %vm121_vm2 = vcmask 1041409   ;;  %s343_s10 = smov [#allocation5]  }
  0x17   :  { %v64_v7 = vadd.f32 %v63_v5, %v62_v3  ;;  %v71_v8 = vadd.f32 %v70_v6, %v69_v4  ;;  %250 = vmatprep.subr.bf16.mxu0 %v341_v14  ;;  %v34_v31 = vld [vmem:[%s408_s0 + $0x8] sm:$0xff]  ;;  %v230_v58 = vld [vmem:[%s411_s3] ss:$0 sm:$0xff]  ;;  %s221_s11 = sshll.u32 %s343_s10, 4  ;;  %s222_s11 = int_to_ptr.vmem [resolvable:$true] %s221_s11 }
  0x18   :  { %s311_s12 = scalar_lea.vmem %s222_s11, 16  ;;  %s315_s13 = scalar_lea.vmem %s222_s11, 32 }
  0x19   :  { %44 = vperm.xlu0 %275, %v36_v2   ;;  %v65_v9 = vrot.slane %v64_v7, 2  ;;  %v72_v10 = vrot.slane %v71_v8, 2  ;;  %p312_p8 = scmp.ne.s32.totalorder %s222_s11, %s311_s12  ;;  %p316_p9 = scmp.lt.s32.totalorder %s222_s11, %s222_s11 }
  0x1a   :  { %251 = vmatpush3.bf16.msra.mxu0 %v278_v17  ;;  %p317_p10 = scmp.lt.s32.totalorder %s315_s13, %s311_s12 }
  0x1b   :  { %v73_v12 = vadd.f32 %v72_v10, %v71_v8  ;;  %v66_v13 = vadd.f32 %v65_v9, %v64_v7  ;;  %252 = vmatprep.subr.bf16.mxu0 %v341_v14 }
  0x1c   :  { %p318_p11 = por %p317_p10, %p316_p9 }
  0x1d   :  { %v67_v15 = vrot.slane %v66_v13, 1  ;;  %v74_v16 = vrot.slane %v73_v12, 1 }
  0x1e   :  { %253 = vmatpush3.bf16.msra.mxu0 %v279_v21  ;;  %p319_p12 = pnand %p318_p11, %p312_p8 }
  0x1f   :  { %v68_v18 = vadd.f32 %v67_v15, %v66_v13  ;;  %v75_v19 = vadd.f32 %v74_v16, %v73_v12  ;;  %254 = vmatprep.subr.bf16.mxu0 %v341_v14 }
  0x21   :  { %v76_v20 = vmax.f32 %v68_v18, 1.0  ;;  %v77_v22 = vmax.f32 %v75_v19, 1.0 }
  0x22   :  { %255 = vmatpush3.bf16.msra.mxu0 %v280_v23 }
  0x23   :  { %80 = vperm.xlu1 %276, %v76_v20   ;;  %256 = vmatprep.subr.bf16.mxu0 %v341_v14 }
  0x26   :  { %257 = vmatpush3.bf16.msra.mxu0 %v281_v24 }
  0x27   :  { %85 = vperm.xlu1 %276, %v77_v22   ;;  %258 = vmatprep.subr.bf16.mxu0 %v341_v14 }
  0x2a   :  { %259 = vmatpush3.bf16.msra.mxu0 %v282_v25 }
  0x2b   :  { %260 = vmatprep.subr.bf16.mxu0 %v341_v14 }
  0x2e   :  { %261 = vmatpush3.bf16.msra.mxu0 %v283_v26 }
  0x2f   :  { %262 = vmatprep.subr.bf16.mxu0 %v341_v14 }
  0x32   :  { %263 = vmatpush3.bf16.msra.mxu0 %v284_v27 }
  0x94   :  { %v40_v29 = vpop.permute.xlu0 %39 }
  0x95   :  { %v47_v30 = vmul.f32 %v40_v29, %v33_v28 }
  0x97   :  { %v49_v33 = vrot.slane %v47_v30, 4 }
  0x98   :  { %v45_v32 = vpop.permute.xlu0 %44 }
  0x99   :  { %v48_v34 = vmul.f32 %v45_v32, %v34_v31  ;;  %v50_v35 = vadd.f32 %v49_v33, %v47_v30 }
  0x9b   :  { %v55_v36 = vrot.slane %v48_v34, 4  ;;  %v51_v37 = vrot.slane %v50_v35, 2 }
  0x9d   :  { %v56_v38 = vadd.f32 %v55_v36, %v48_v34  ;;  %v52_v40 = vadd.f32 %v51_v37, %v50_v35 }
  0x9f   :  { %v57_v41 = vrot.slane %v56_v38, 2  ;;  %v53_v43 = vrot.slane %v52_v40, 1 }
  0xa1   :  { %v58_v44 = vadd.f32 %v57_v41, %v56_v38  ;;  %v54_v45 = vadd.f32 %v53_v43, %v52_v40 }
  0xa2   :  { %v81_v39 = vpop.permute.xlu1 %80 }
  0xa3   :  { %285 = vrcp.f32 %v81_v39  ;;  %v59_v46 = vrot.slane %v58_v44, 1 }
  0xa5   :  { %v60_v49 = vadd.f32 %v59_v46, %v58_v44 }
  0xa6   :  { %v86_v42 = vpop.permute.xlu1 %85 }
  0xa7   :  { %287 = vrcp.f32 %v86_v42 }
  0xad   :  { %v286_v47 = vpop.eup %285 }
  0xae   :  { %v89_v48 = vmul.f32 %v286_v47, %v54_v45 }
  0xb0   :  { %v92_v52 = vpack.c.bf16 %v89_v48, %v89_v48 }
  0xb1   :  { %v288_v50 = vpop.eup %287 }
  0xb2   :  { %v91_v51 = vmul.f32 %v288_v50, %v60_v49  ;;  %v119_v54 = vunpack.c.l.b16 %v92_v52 }
  0xb4   :  { %v93_v53 = vpack.c.bf16 %v91_v51, %v91_v51 }
  0xb6   :  { %v120_v55 = vunpack.c.l.b16 %v93_v53 }
  0xb8   :  { %v122_v56 = vsel %vm121_vm2, %v120_v55, %v119_v54 }
  0xb9   :  { %v123_v57 = vpack.c.b16 %v122_v56, %v122_v56 }
  0xbb   :  { %265 = vmatmul.mubr.bf16.vlgmr.msra.gmra.mrb[0].mxu0 %v123_v57 }
 0x18e   :  { %v207_v59 = vpop.f32.mrb[0].mxu0 }
 0x18f   :  { %v208_v60 = vadd.f32 %v230_v58, %v207_v59  ;;  %v266_v61 = vpop.f32.mrb[1].mxu0 }
 0x190   :  { %v210_v62 = vpop.f32.mrb[2].mxu0 }
 0x191   :  { %v213_v63 = vpack.c.bf16 %v208_v60, %v208_v60  ;;  %v267_v0 = vpop.f32.mrb[3].mxu0 }
 0x193   :  { %214 = vst [vmem:[#allocation5] sm:$0x1] %v213_v63 }
 0x194   :  { %322 = shalt.err (!%p319_p12)
}
 0x195   :  { %s323_s15 = scalar_lea.hbm %s412_s4, 16 }
 0x196   :  { %p324_p13 = scmp.ne.s32.totalorder %s412_s4, %s323_s15  ;;  %p327_p0 = scmp.lt.u32.totalorder %s323_s15, %s412_s4 }
 0x198   :  { %p329_p1 = pnand %p327_p0, %p324_p13 }
 0x19a   :  { %332 = shalt.err (!%p329_p1)
}
 0x19b   :  { %224 = dma.vmem_to_hbm [thread:$0]  %s222_s11, 16, %s412_s4, [#allocation4]  }
 0x19c   :  { %335 = dma.done.wait [#allocation4], 16  }
 0x19d   :  { %336 = vsyncadd [#allocation4], 4294967280 }
 0x19e   :  { %228 = vsyncpa [#allocation3], 1 }
 0x19f   :  { %229 = vsyncpa [#allocation4], 1 }

</bundles_post_ra>
